<compile_context>
chip_gen: v6e
topology: v6e:2x2x1
jax: 0.10.0
libtpu: 0.0.40
codegen_flags: <defaults>
</compile_context>

<pallas_src>
import functools

import numpy as np
import jax
import jax.numpy as jnp
from jax import lax
from jax.experimental import pallas as pl
from jax.experimental.pallas import tpu as pltpu


# ---------------------------------------------------------------------------
# RoPE tables (exactly mirrors SinusoidalPositionEmbedding(..., 'zero') followed by
# pos[..., 1::2].repeat(1,1,1,2): torch .repeat TILES along the last dim).
# ---------------------------------------------------------------------------
def _rope_tables(N, D):
    pos = jnp.arange(N, dtype=jnp.float32)
    idx = jnp.arange(D // 2, dtype=jnp.float32)
    theta = jnp.power(10000.0, -2.0 * idx / D)                    # (D/2,)
    ang = pos[:, None] * theta[None, :]                           # (N, D/2)
    cos_pos = jnp.tile(jnp.cos(ang), (1, 2))                      # (N, D)  tiled, NOT interleaved
    sin_pos = jnp.tile(jnp.sin(ang), (1, 2))                      # (N, D)
    return cos_pos, sin_pos


def _column_permutation(heads, D):
    """Permute dense-output columns to [all q | all k], each head de-interleaved."""
    deint = np.concatenate([np.arange(0, D, 2), np.arange(1, D, 2)])     # within-head perm
    q_cols = np.concatenate([h * 2 * D + deint for h in range(heads)])
    k_cols = np.concatenate([h * 2 * D + D + deint for h in range(heads)])
    return np.concatenate([q_cols, k_cols]), deint


# ---------------------------------------------------------------------------
# Kernel
# ---------------------------------------------------------------------------
def _global_pointer_kernel(heads, D, TQ,
                           x_ref, w_ref, b_ref, cos_ref, sin_ref,
                           logits_ref, h_ref, kr_ref):
    """Grid = (B, N // TQ).

    x_ref:      (1, N, hidden)      bf16
    w_ref:      (hidden, 2*heads*D) bf16   (column-permuted wrapper-side)
    b_ref:      (1, 2*heads*D)      f32
    cos_ref:    (N, D)              f32    (de-interleaved cos table)
    sin_ref:    (N, D)              f32    (de-interleaved sin table, rotate-half sign folded in)
    logits_ref: (1, heads, TQ, N)   f32
    h_ref:      (1, N, 2*heads*D)   f32    resident across the query-tile axis
    kr_ref:     (N, heads*D)        bf16   VMEM scratch: RoPE'd K for all heads
    """
    H = D // 2
    hd = heads * D
    qi = pl.program_id(1)
    scale = 1.0 / (D ** 0.5)

    def rot_half(t):
        # de-interleaved rotate-half == swap the even/odd halves (sign lives in sin table)
        return pltpu.roll(t, H, 1)

    # --- once per batch element: projection + RoPE'd K cache (hot MXU matmul) ------
    @pl.when(qi == 0)
    def _():
        x = x_ref[0]                                                        # (N, hidden) bf16
        h_full = jnp.dot(x, w_ref[...],
                         preferred_element_type=jnp.float32) + b_ref[...]   # (N, 2*hd) f32
        h_ref[0] = h_full                                                   # lane-dense store

        cos = cos_ref[...]
        sin_s = sin_ref[...]
        for hh in range(heads):
            k = h_full[:, hd + hh * D: hd + (hh + 1) * D]                   # (N, D) f32
            kr = k * cos + rot_half(k) * sin_s                              # RoPE (VPU/XLU)
            kr_ref[:, hh * D:(hh + 1) * D] = kr.astype(kr_ref.dtype)        # bf16 cache

    # --- every step: RoPE the query tile and score it against the cached K ----------
    q0 = pl.multiple_of(qi * TQ, TQ)
    qrows = h_ref[0, pl.ds(q0, TQ), :]                                      # (TQ, 2*hd) f32
    qpart = qrows[:, :hd] * scale                                           # fold 1/sqrt(D) into q
    cos_q = cos_ref[pl.ds(q0, TQ), :]
    sin_q = sin_ref[pl.ds(q0, TQ), :]

    for hh in range(heads):
        q = qpart[:, hh * D:(hh + 1) * D]                                   # (TQ, D) f32
        qr = (q * cos_q + rot_half(q) * sin_q).astype(jnp.bfloat16)         # RoPE'd, bf16 for MXU
        kr = kr_ref[:, hh * D:(hh + 1) * D]                                 # (N, D) bf16
        # contract on dim 1 of both operands: no explicit kr.T
        logits_ref[0, hh] = lax.dot_general(
            qr, kr, (((1,), (1,)), ((), ())),
            preferred_element_type=jnp.float32)                             # (TQ, N) f32


# ---------------------------------------------------------------------------
# Wrapper
# ---------------------------------------------------------------------------
def global_pointer(x, w_t, b, heads, head_size, rope=True, block_q=None, heads_last=True):
    """Pallas implementation of GlobalPointer.forward (the torch `mask` arg is unused
    by the reference forward).  Returns (logits, org_qw, org_kw)."""
    B, N, hidden = x.shape
    D = head_size
    assert D % 2 == 0
    H = D // 2
    hd = heads * D
    out_dim = 2 * hd
    assert w_t.shape == (hidden, out_dim)

    if block_q is None:
        block_q = N
        for cand in (512, 256, 128, 64, 32, 16, 8):
            if N % cand == 0:
                block_q = cand
                break
    TQ = block_q
    assert N % TQ == 0

    col_perm, deint = _column_permutation(heads, D)

    if rope:
        cos_pos, sin_pos = _rope_tables(N, D)
    else:
        cos_pos = jnp.ones((N, D), jnp.float32)
        sin_pos = jnp.zeros((N, D), jnp.float32)
    sign = np.concatenate([-np.ones(H, np.float32), np.ones(H, np.float32)])
    cos_d = cos_pos[:, deint]                                    # de-interleaved
    sin_d = sin_pos[:, deint] * jnp.asarray(sign)[None, :]       # rotate-half sign folded in

    x_bf = x.astype(jnp.bfloat16)
    w_bf = w_t[:, col_perm].astype(jnp.bfloat16)
    b_p = b[col_perm].reshape(1, out_dim).astype(jnp.float32)

    kernel = functools.partial(_global_pointer_kernel, heads, D, TQ)

    # rough per-step VMEM budget (double-buffered blocks + scratch); set the scoped
    # limit explicitly so pipelining stays alive on v5e and tiles fit v7x's 64 MiB.
    vmem_est = (2 * N * hidden * 2            # x block (bf16)
                + 2 * hidden * out_dim * 2    # W (bf16)
                + 2 * out_dim * 4             # bias
                + 2 * 2 * N * D * 4           # cos + sin
                + 2 * heads * TQ * N * 4      # logits tile
                + 2 * N * out_dim * 4         # resident h block
                + N * hd * 2)                 # kr scratch (bf16)
    vmem_limit = int(min(max(2 * vmem_est, 16 * 2 ** 20), 48 * 2 ** 20))

    logits_bhqn, h_out = pl.pallas_call(
        kernel,
        out_shape=(
            jax.ShapeDtypeStruct((B, heads, N, N), jnp.float32),
            jax.ShapeDtypeStruct((B, N, out_dim), jnp.float32),
        ),
        grid_spec=pltpu.PrefetchScalarGridSpec(
            num_scalar_prefetch=0,
            grid=(B, N // TQ),
            in_specs=[
                pl.BlockSpec((1, N, hidden), lambda bi, qi: (bi, 0, 0)),
                pl.BlockSpec((hidden, out_dim), lambda bi, qi: (0, 0)),
                pl.BlockSpec((1, out_dim), lambda bi, qi: (0, 0)),
                pl.BlockSpec((N, D), lambda bi, qi: (0, 0)),
                pl.BlockSpec((N, D), lambda bi, qi: (0, 0)),
            ],
            out_specs=(
                pl.BlockSpec((1, heads, TQ, N), lambda bi, qi: (bi, 0, qi, 0)),
                pl.BlockSpec((1, N, out_dim), lambda bi, qi: (bi, 0, 0)),
            ),
            scratch_shapes=[pltpu.VMEM((N, hd), jnp.bfloat16)],
        ),
        compiler_params=pltpu.CompilerParams(
            dimension_semantics=("parallel", "arbitrary"),
            vmem_limit_bytes=vmem_limit,
        ),
    )(x_bf, w_bf, b_p, cos_d, sin_d)

    # Recover org_qw / org_kw from the single lane-dense projection output.
    # Columns are [all-q | all-k], each head laid out as [even feats | odd feats];
    # re-interleave with a reshape/swapaxes (pure layout ops, no gather).
    def _reinterleave(part):                                     # (B, N, hd) permuted
        t = part.reshape(B, N, heads, 2, H)                      # [even-group, odd-group]
        t = jnp.swapaxes(t, -1, -2)                              # (B, N, heads, H, 2)
        return t.reshape(B, N, heads, D)

    org_qw = _reinterleave(h_out[..., :hd])
    org_kw = _reinterleave(h_out[..., hd:])

    logits = jnp.transpose(logits_bhqn, (0, 2, 3, 1)) if heads_last else logits_bhqn
    return logits, org_qw, org_kw


# ---------------------------------------------------------------------------
# Pure-JAX references for verification
# ---------------------------------------------------------------------------
def _reference_f32(x, w_t, b, heads, D, rope=True):
    """Exact f32 transcription of the PyTorch forward."""
    B, N, hidden = x.shape
    h = x @ w_t + b
    h = h.reshape(B, N, heads, 2 * D)
    qw, kw = h[..., :D], h[..., D:]
    org_qw, org_kw = qw, kw
    if rope:
        cos_pos, sin_pos = _rope_tables(N, D)
        c = cos_pos[None, :, None, :]
        s = sin_pos[None, :, None, :]

        def rot(t):
            t2 = jnp.stack([-t[..., 1::2], t[..., ::2]], axis=-1).reshape(t.shape)
            return t * c + t2 * s

        qw = rot(qw)
        kw = rot(kw)
    logits = jnp.einsum('bmhd,bnhd->bhmn', qw, kw) / (D ** 0.5)
    return jnp.transpose(logits, (0, 2, 3, 1)), org_qw, org_kw


def _reference_matched(x, w_t, b, heads, D, rope=True):
    """Same algorithm with the kernel's bf16 MXU inputs / f32 accumulation."""
    B, N, hidden = x.shape
    h = jnp.dot(x.astype(jnp.bfloat16), w_t.astype(jnp.bfloat16),
                preferred_element_type=jnp.float32) + b
    h = h.reshape(B, N, heads, 2 * D)
    qw, kw = h[..., :D], h[..., D:]
    org_qw, org_kw = qw, kw
    scale = 1.0 / (D ** 0.5)
    qs = qw * scale
    if rope:
        cos_pos, sin_pos = _rope_tables(N, D)
        c = cos_pos[None, :, None, :]
        s = sin_pos[None, :, None, :]

        def rot(t):
            t2 = jnp.stack([-t[..., 1::2], t[..., ::2]], axis=-1).reshape(t.shape)
            return t * c + t2 * s

        qs = rot(qs)
        kw = rot(kw)
    logits = jnp.einsum('bmhd,bnhd->bhmn',
                        qs.astype(jnp.bfloat16), kw.astype(jnp.bfloat16),
                        preferred_element_type=jnp.float32)
    return jnp.transpose(logits, (0, 2, 3, 1)), org_qw, org_kw


if __name__ == "__main__":
    B, N, hidden = 2, 16, 32
    heads, head_size = 2, 128
    out_dim = heads * 2 * head_size

    key = jax.random.PRNGKey(0)
    kx, kw, kb = jax.random.split(key, 3)
    x = jax.random.normal(kx, (B, N, hidden), dtype=jnp.float32)
    # nn.Linear(hidden, out_dim): weight is (out_dim, hidden); pass it transposed.
    w_t = 0.05 * jax.random.normal(kw, (hidden, out_dim), dtype=jnp.float32)
    b = 0.01 * jax.random.normal(kb, (out_dim,), dtype=jnp.float32)

    # block_q=8 -> grid=(2, 2): exercises the cached-K / resident-h revisiting path.
    logits, org_qw, org_kw = global_pointer(x, w_t, b, heads, head_size,
                                            rope=True, block_q=8)
    jax.block_until_ready((logits, org_qw, org_kw))

    assert logits.shape == (B, N, N, heads)
    assert org_qw.shape == (B, N, heads, head_size)
    assert org_kw.shape == (B, N, heads, head_size)

    # 1) exact-algorithm check against a bf16-matched reference (tight tolerance)
    m_logits, m_qw, m_kw = _reference_matched(x, w_t, b, heads, head_size, rope=True)
    assert jnp.allclose(logits, m_logits, atol=1e-4, rtol=1e-4)
    assert jnp.allclose(org_qw, m_qw, atol=1e-4, rtol=1e-4)
    assert jnp.allclose(org_kw, m_kw, atol=1e-4, rtol=1e-4)

    # 2) closeness to the exact f32 torch semantics (bf16 MXU inputs -> relaxed tol)
    f_logits, f_qw, f_kw = _reference_f32(x, w_t, b, heads, head_size, rope=True)
    assert jnp.allclose(logits, f_logits, atol=2e-2, rtol=2e-2)
    assert jnp.allclose(org_qw, f_qw, atol=2e-2, rtol=2e-2)
    assert jnp.allclose(org_kw, f_kw, atol=2e-2, rtol=2e-2)

    print("KERNEL_OK")
</pallas_src>

<mosaic_0001>
module attributes {stable_mosaic.version = 11 : i64} {
  func.func @_global_pointer_kernel(%arg0: i32, %arg1: i32, %arg2: memref<1x16x32xbf16, #tpu.memory_space<vmem>>, %arg3: memref<32x512xbf16, #tpu.memory_space<vmem>>, %arg4: memref<1x512xf32, #tpu.memory_space<vmem>>, %arg5: memref<16x128xf32, #tpu.memory_space<vmem>>, %arg6: memref<16x128xf32, #tpu.memory_space<vmem>>, %arg7: memref<1x2x8x16xf32, #tpu.memory_space<vmem>>, %arg8: memref<1x16x512xf32, #tpu.memory_space<vmem>>, %arg9: memref<16x256xbf16, #tpu.memory_space<vmem>>) attributes {dimension_semantics = [#tpu.dimension_semantics<parallel>, #tpu.dimension_semantics<arbitrary>], iteration_bounds = array<i64: 2, 2>, scalar_prefetch = 0 : i64, scratch_operands = 1 : i64, tpu.core_type = #tpu.core_type<tc>, window_params = [{transform_indices = @transform_0, window_bounds = array<i64: 1, 16, 32>}, {pipeline_mode = #tpu.pipeline_mode<synchronous>, transform_indices = @transform_1, window_bounds = array<i64: 32, 512>}, {pipeline_mode = #tpu.pipeline_mode<synchronous>, transform_indices = @transform_2, window_bounds = array<i64: 1, 512>}, {pipeline_mode = #tpu.pipeline_mode<synchronous>, transform_indices = @transform_3, window_bounds = array<i64: 16, 128>}, {pipeline_mode = #tpu.pipeline_mode<synchronous>, transform_indices = @transform_4, window_bounds = array<i64: 16, 128>}, {transform_indices = @transform_5, window_bounds = array<i64: 1, 2, 8, 16>}, {transform_indices = @transform_6, window_bounds = array<i64: 1, 16, 512>}]} {
    %c0_i32 = arith.constant 0 : i32
    %0 = arith.cmpi eq, %arg1, %c0_i32 : i32
    %1 = arith.extui %0 : i1 to i32
    %c0_i32_0 = arith.constant 0 : i32
    %2 = arith.cmpi ne, %1, %c0_i32_0 : i32
    scf.if %2 {
      %c0_17 = arith.constant 0 : index
      %c0_18 = arith.constant 0 : index
      %c0_19 = arith.constant 0 : index
      %37 = vector.load %arg2[%c0_17, %c0_18, %c0_19] : memref<1x16x32xbf16, #tpu.memory_space<vmem>>, vector<1x16x32xbf16>
      %38 = vector.shape_cast %37 : vector<1x16x32xbf16> to vector<16x32xbf16>
      %c0_20 = arith.constant 0 : index
      %c0_21 = arith.constant 0 : index
      %39 = vector.load %arg3[%c0_20, %c0_21] : memref<32x512xbf16, #tpu.memory_space<vmem>>, vector<32x512xbf16>
      %cst_22 = arith.constant dense<0.000000e+00> : vector<16x512xf32>
      %40 = tpu.matmul %38, %39, %cst_22 {dimension_numbers = #tpu.dot_dimension_numbers<[1], [0], [0], [1], [0, 0, 1, 1], [], []>} : vector<16x32xbf16>, vector<32x512xbf16>, vector<16x512xf32> -> vector<16x512xf32>
      %c0_23 = arith.constant 0 : index
      %c0_24 = arith.constant 0 : index
      %41 = vector.load %arg4[%c0_23, %c0_24] : memref<1x512xf32, #tpu.memory_space<vmem>>, vector<1x512xf32>
      %42 = vector.broadcast %41 : vector<1x512xf32> to vector<16x512xf32>
      %43 = arith.addf %40, %42 : vector<16x512xf32>
      %c0_25 = arith.constant 0 : index
      %c0_26 = arith.constant 0 : index
      %c0_27 = arith.constant 0 : index
      %44 = vector.load %arg8[%c0_25, %c0_26, %c0_27] : memref<1x16x512xf32, #tpu.memory_space<vmem>>, vector<1x16x512xf32>
      %45 = vector.shape_cast %44 : vector<1x16x512xf32> to vector<16x512xf32>
      %46 = vector.shape_cast %43 : vector<16x512xf32> to vector<1x16x512xf32>
      tpu.vector_store %arg8[%c0_25, %c0_26, %c0_27], %46 {strides = array<i32>} : memref<1x16x512xf32, #tpu.memory_space<vmem>>, vector<1x16x512xf32>,
      %c0_28 = arith.constant 0 : index
      %c0_29 = arith.constant 0 : index
      %47 = vector.load %arg5[%c0_28, %c0_29] : memref<16x128xf32, #tpu.memory_space<vmem>>, vector<16x128xf32>
      %c0_30 = arith.constant 0 : index
      %c0_31 = arith.constant 0 : index
      %48 = vector.load %arg6[%c0_30, %c0_31] : memref<16x128xf32, #tpu.memory_space<vmem>>, vector<16x128xf32>
      %49 = vector.extract_strided_slice %43 {offsets = [0, 256], sizes = [16, 128], strides = [1, 1]} : vector<16x512xf32> to vector<16x128xf32>
      %50 = arith.mulf %49, %47 : vector<16x128xf32>
      %c64_i32_32 = arith.constant 64 : i32
      %51 = tpu.dynamic_rotate %49 by %c64_i32_32 dim 1 : vector<16x128xf32>, i32 -> vector<16x128xf32>
      %52 = arith.mulf %51, %48 : vector<16x128xf32>
      %53 = arith.addf %50, %52 : vector<16x128xf32>
      %54 = arith.truncf %53 : vector<16x128xf32> to vector<16x128xbf16>
      %c0_33 = arith.constant 0 : index
      %c0_34 = arith.constant 0 : index
      %55 = vector.load %arg9[%c0_33, %c0_34] : memref<16x256xbf16, #tpu.memory_space<vmem>>, vector<16x128xbf16>
      tpu.vector_store %arg9[%c0_33, %c0_34], %54 {strides = array<i32>} : memref<16x256xbf16, #tpu.memory_space<vmem>>, vector<16x128xbf16>,
      %56 = vector.extract_strided_slice %43 {offsets = [0, 384], sizes = [16, 128], strides = [1, 1]} : vector<16x512xf32> to vector<16x128xf32>
      %57 = arith.mulf %56, %47 : vector<16x128xf32>
      %c64_i32_35 = arith.constant 64 : i32
      %58 = tpu.dynamic_rotate %56 by %c64_i32_35 dim 1 : vector<16x128xf32>, i32 -> vector<16x128xf32>
      %59 = arith.mulf %58, %48 : vector<16x128xf32>
      %60 = arith.addf %57, %59 : vector<16x128xf32>
      %61 = arith.truncf %60 : vector<16x128xf32> to vector<16x128xbf16>
      %c0_36 = arith.constant 0 : index
      %c128_37 = arith.constant 128 : index
      %62 = vector.load %arg9[%c0_36, %c128_37] : memref<16x256xbf16, #tpu.memory_space<vmem>>, vector<16x128xbf16>
      tpu.vector_store %arg9[%c0_36, %c128_37], %61 {strides = array<i32>} : memref<16x256xbf16, #tpu.memory_space<vmem>>, vector<16x128xbf16>,
    } else {
    }
    %c8_i32 = arith.constant 8 : i32
    %3 = arith.muli %arg1, %c8_i32 : i32
    %4 = tpu.assume_multiple %3, 8 : i32
    %c0 = arith.constant 0 : index
    %5 = arith.index_cast %4 : i32 to index
    %c0_1 = arith.constant 0 : index
    %6 = vector.load %arg8[%c0, %5, %c0_1] : memref<1x16x512xf32, #tpu.memory_space<vmem>>, vector<1x8x512xf32>
    %7 = vector.shape_cast %6 : vector<1x8x512xf32> to vector<8x512xf32>
    %8 = vector.extract_strided_slice %7 {offsets = [0, 0], sizes = [8, 256], strides = [1, 1]} : vector<8x512xf32> to vector<8x256xf32>
    %cst = arith.constant 0.0883883461 : f32
    %9 = vector.broadcast %cst : f32 to vector<8x256xf32>
    %10 = arith.mulf %8, %9 : vector<8x256xf32>
    %11 = arith.index_cast %4 : i32 to index
    %c0_2 = arith.constant 0 : index
    %12 = vector.load %arg5[%11, %c0_2] : memref<16x128xf32, #tpu.memory_space<vmem>>, vector<8x128xf32>
    %13 = arith.index_cast %4 : i32 to index
    %c0_3 = arith.constant 0 : index
    %14 = vector.load %arg6[%13, %c0_3] : memref<16x128xf32, #tpu.memory_space<vmem>>, vector<8x128xf32>
    %15 = vector.extract_strided_slice %10 {offsets = [0, 0], sizes = [8, 128], strides = [1, 1]} : vector<8x256xf32> to vector<8x128xf32>
    %16 = arith.mulf %15, %12 : vector<8x128xf32>
    %c64_i32 = arith.constant 64 : i32
    %17 = tpu.dynamic_rotate %15 by %c64_i32 dim 1 : vector<8x128xf32>, i32 -> vector<8x128xf32>
    %18 = arith.mulf %17, %14 : vector<8x128xf32>
    %19 = arith.addf %16, %18 : vector<8x128xf32>
    %20 = arith.truncf %19 : vector<8x128xf32> to vector<8x128xbf16>
    %c0_4 = arith.constant 0 : index
    %c0_5 = arith.constant 0 : index
    %21 = vector.load %arg9[%c0_4, %c0_5] : memref<16x256xbf16, #tpu.memory_space<vmem>>, vector<16x128xbf16>
    %cst_6 = arith.constant dense<0.000000e+00> : vector<8x16xf32>
    %22 = tpu.matmul %20, %21, %cst_6 {dimension_numbers = #tpu.dot_dimension_numbers<[1], [1], [0], [0], [0, 0, 1, 0], [], []>} : vector<8x128xbf16>, vector<16x128xbf16>, vector<8x16xf32> -> vector<8x16xf32>
    %c0_7 = arith.constant 0 : index
    %c0_8 = arith.constant 0 : index
    %c0_9 = arith.constant 0 : index
    %c0_10 = arith.constant 0 : index
    %23 = vector.load %arg7[%c0_7, %c0_8, %c0_9, %c0_10] : memref<1x2x8x16xf32, #tpu.memory_space<vmem>>, vector<1x1x8x16xf32>
    %24 = vector.shape_cast %23 : vector<1x1x8x16xf32> to vector<8x16xf32>
    %25 = vector.shape_cast %22 : vector<8x16xf32> to vector<1x1x8x16xf32>
    tpu.vector_store %arg7[%c0_7, %c0_8, %c0_9, %c0_10], %25 {strides = array<i32>} : memref<1x2x8x16xf32, #tpu.memory_space<vmem>>, vector<1x1x8x16xf32>,
    %26 = vector.extract_strided_slice %10 {offsets = [0, 128], sizes = [8, 128], strides = [1, 1]} : vector<8x256xf32> to vector<8x128xf32>
    %27 = arith.mulf %26, %12 : vector<8x128xf32>
    %c64_i32_11 = arith.constant 64 : i32
    %28 = tpu.dynamic_rotate %26 by %c64_i32_11 dim 1 : vector<8x128xf32>, i32 -> vector<8x128xf32>
    %29 = arith.mulf %28, %14 : vector<8x128xf32>
    %30 = arith.addf %27, %29 : vector<8x128xf32>
    %31 = arith.truncf %30 : vector<8x128xf32> to vector<8x128xbf16>
    %c0_12 = arith.constant 0 : index
    %c128 = arith.constant 128 : index
    %32 = vector.load %arg9[%c0_12, %c128] : memref<16x256xbf16, #tpu.memory_space<vmem>>, vector<16x128xbf16>
    %cst_13 = arith.constant dense<0.000000e+00> : vector<8x16xf32>
    %33 = tpu.matmul %31, %32, %cst_13 {dimension_numbers = #tpu.dot_dimension_numbers<[1], [1], [0], [0], [0, 0, 1, 0], [], []>} : vector<8x128xbf16>, vector<16x128xbf16>, vector<8x16xf32> -> vector<8x16xf32>
    %c0_14 = arith.constant 0 : index
    %c1 = arith.constant 1 : index
    %c0_15 = arith.constant 0 : index
    %c0_16 = arith.constant 0 : index
    %34 = vector.load %arg7[%c0_14, %c1, %c0_15, %c0_16] : memref<1x2x8x16xf32, #tpu.memory_space<vmem>>, vector<1x1x8x16xf32>
    %35 = vector.shape_cast %34 : vector<1x1x8x16xf32> to vector<8x16xf32>
    %36 = vector.shape_cast %33 : vector<8x16xf32> to vector<1x1x8x16xf32>
    tpu.vector_store %arg7[%c0_14, %c1, %c0_15, %c0_16], %36 {strides = array<i32>} : memref<1x2x8x16xf32, #tpu.memory_space<vmem>>, vector<1x1x8x16xf32>,
    return
  }
  func.func @transform_0(%arg0: i32, %arg1: i32) -> (i32, i32, i32) {
    %c0_i32 = arith.constant 0 : i32
    %c0_i32_0 = arith.constant 0 : i32
    %c0_i32_1 = arith.constant 0 : i32
    return %arg0, %c0_i32, %c0_i32_0 : i32, i32, i32
  }
  func.func @transform_1(%arg0: i32, %arg1: i32) -> (i32, i32) {
    %c0_i32 = arith.constant 0 : i32
    %c0_i32_0 = arith.constant 0 : i32
    %c0_i32_1 = arith.constant 0 : i32
    return %c0_i32, %c0_i32_0 : i32, i32
  }
  func.func @transform_2(%arg0: i32, %arg1: i32) -> (i32, i32) {
    %c0_i32 = arith.constant 0 : i32
    %c0_i32_0 = arith.constant 0 : i32
    %c0_i32_1 = arith.constant 0 : i32
    return %c0_i32, %c0_i32_0 : i32, i32
  }
  func.func @transform_3(%arg0: i32, %arg1: i32) -> (i32, i32) {
    %c0_i32 = arith.constant 0 : i32
    %c0_i32_0 = arith.constant 0 : i32
    %c0_i32_1 = arith.constant 0 : i32
    return %c0_i32, %c0_i32_0 : i32, i32
  }
  func.func @transform_4(%arg0: i32, %arg1: i32) -> (i32, i32) {
    %c0_i32 = arith.constant 0 : i32
    %c0_i32_0 = arith.constant 0 : i32
    %c0_i32_1 = arith.constant 0 : i32
    return %c0_i32, %c0_i32_0 : i32, i32
  }
  func.func @transform_5(%arg0: i32, %arg1: i32) -> (i32, i32, i32, i32) {
    %c0_i32 = arith.constant 0 : i32
    %c0_i32_0 = arith.constant 0 : i32
    %c0_i32_1 = arith.constant 0 : i32
    return %arg0, %c0_i32, %arg1, %c0_i32_0 : i32, i32, i32, i32
  }
  func.func @transform_6(%arg0: i32, %arg1: i32) -> (i32, i32, i32) {
    %c0_i32 = arith.constant 0 : i32
    %c0_i32_0 = arith.constant 0 : i32
    %c0_i32_1 = arith.constant 0 : i32
    return %arg0, %c0_i32, %c0_i32_0 : i32, i32, i32
  }
}

</mosaic_0001>

<bundles_post_ra>
// kernel: tpu_custom_call.1
= control target key start
LH: loop header
LB: loop body
LE: loop exit
PB: predicated region body
PF: predicated region fallthrough
CT: control target
= control target key end

     0   :  { %s1842_s0 = inlined_call_operand.hbm [shape: bf16[2,16,32], index: 0, kind: input, shape index: {}]   ;;  %s1843_s1 = inlined_call_operand.hbm [shape: bf16[32,512], index: 1, kind: input, shape index: {}]   ;;  %s1844_s2 = inlined_call_operand.hbm [shape: f32[1,512], index: 2, kind: input, shape index: {}]   ;;  %s1845_s3 = inlined_call_operand.hbm [shape: f32[16,128], index: 3, kind: input, shape index: {}]   ;;  %s1846_s4 = inlined_call_operand.hbm [shape: f32[16,128], index: 4, kind: input, shape index: {}]   ;;  %s1847_s5 = inlined_call_operand.hbm [shape: f32[2,2,16,16], index: 5, kind: output, shape index: {0}]   ;;  %s1848_s6 = inlined_call_operand.hbm [shape: f32[2,16,512], index: 6, kind: output, shape index: {1}]  }
   0x1   :  { %1865 = sst [smem:[#allocation27_spill]] %s1843_s1 }
   0x2   :  { %1866 = sst [smem:[#allocation28_spill]] %s1844_s2 }
   0x3   :  { %1867 = sst [smem:[#allocation29_spill]] %s1845_s3 }
   0x4   :  { %1868 = sst [smem:[#allocation30_spill]] %s1846_s4 }
   0x5   :  { %1869 = sst [smem:[#allocation31_spill]] %s1847_s5 }
   0x6   :  { %1870 = sst [smem:[#allocation32_spill]] %s1848_s6 }
   0x7   :  { %12 = vsyncpa [#allocation4], 0 }
   0x8   :  { %14 = vsyncpa [#allocation4 + $0x1], 0 }
   0x9   :  { %15 = vsyncpa [#allocation7], 0 }
   0xa   :  { %16 = vsyncpa [#allocation10], 0 }
   0xb   :  { %17 = vsyncpa [#allocation5], 0 }
   0xc   :  { %19 = vsyncpa [#allocation5 + $0x1], 0 }
   0xd   :  { %20 = vsyncpa [#allocation14], 0 }
   0xe   :  { %22 = vsyncpa [#allocation14 + $0x1], 0  ;;  %s1500_s21 = smov 0   ;;  %s1502_s22 = smov 0  }
   0xf   :  { %s1504_s23 = smov 0   ;;  %s1506_s24 = smov 0  }
  0x10   :  { %s1508_s25 = smov 0   ;;  %s1510_s26 = smov 0  }
  0x11   :  { %s1512_s27 = smov 0   ;;  %s1514_s28 = smov 0  }
  0x12   :  { %s1516_s29 = smov 0   ;;  %s1518_s30 = smov 0  }
  0x13   :  { %s1520_s7 = smov 0  }
  0x14 LB: > { %1871 = sst [smem:[#allocation20_spill]] %s1400_s21  ;;  %s899_s8 = sadd.s32 4294967295, %s1440_s7   ;;  %s1440_s7 = sphi %s1520_s7, %s28_s7   ;;  %s1436_s30 = sphi %s1518_s30, %s1916_s30   ;;  %s1432_s29 = sphi %s1516_s29, %s1908_s29   ;;  %s1428_s28 = sphi %s1514_s28, %s1915_s28   ;;  %s1424_s27 = sphi %s1512_s27, %s1907_s27   ;;  %s1420_s26 = sphi %s1510_s26, %s1914_s26   ;;  %s1416_s25 = sphi %s1508_s25, %s1913_s25   ;;  %s1412_s24 = sphi %s1506_s24, %s1912_s24   ;;  %s1408_s23 = sphi %s1504_s23, %s1911_s23   ;;  %s1404_s22 = sphi %s1502_s22, %s1910_s22   ;;  %s1400_s21 = sphi %s1500_s21, %s1909_s21  }
  0x15   : > { %1872 = sst [smem:[#allocation21_spill]] %s1412_s24  ;;  %s900_s9 = sadd.s32 4294967294, %s1440_s7  }
  0x16   : > { %1873 = sst [smem:[#allocation22_spill]] %s1432_s29  ;;  %p60_p0 = scmp.ne.s32.totalorder %s1416_s25, %s1412_s24 }
  0x17   : > { %p1559_p1 = scmp.eq.s32.totalorder %s899_s8, 0  ;;  %p169_p2 = scmp.ne.s32.totalorder %s1408_s23, %s1404_s22 }
  0x18   : > { %p1565_p3 = scmp.eq.s32.totalorder %s899_s8, 3  ;;  %p175_p5 = scmp.ne.s32.totalorder %s1404_s22, %s1400_s21 }
  0x19   : > { %s1874_s10 = scalar_select %p1559_p1, 1, 0 }
  0x1a   : > { %s1875_s11 = scalar_select %p1565_p3, 1, 0 }
  0x1b   : > { %p1571_p4 = por %p1559_p1, %p60_p0  ;;  %p1579_p6 = por %p1565_p3, %p169_p2 }
  0x1c   : > { %p176_p7 = scmp.eq.s32.totalorder %s900_s9, 3  ;;  %p901_p8 = scmp.ge.s32.totalorder %s1440_s7, 1 }
  0x1d   : > { %s1876_s12 = scalar_select %p1571_p4, 1, 0 }
  0x1e   : > { %s1877_s13 = scalar_select %p1579_p6, 1, 0 }
  0x1f   : > { %p209_p9 = scmp.lt.s32.totalorder %s1440_s7, 5  ;;  %p1585_p10 = por %p176_p7, %p175_p5 }
  0x20   : > { %1878 = sst [smem:[#allocation23_spill]] %s1877_s13  ;;  %p1589_p11 = por %p176_p7, %p60_p0 }
  0x21   : > { %s1879_s14 = scalar_select %p1585_p10, 1, 0 }
  0x22   : > { %s1881_s15 = scalar_select %p1589_p11, 1, 0 }
  0x23   : > { %1880 = sst [smem:[#allocation24_spill]] %s1879_s14  ;;  %p1593_p12 = pnand %p901_p8, %p209_p9 }
  0x24   : > { %1882 = sst [smem:[#allocation25_spill]] %s1881_s15  ;;  %s1442_s17 = smov [#allocation6]  }
  0x25   : > { %s1883_s16 = scalar_select %p1593_p12, 1, 0 }
  0x26   : > { %p993_p13 = pneg %p1593_p12  ;;  %s221_s18 = sshll.u32 %s1442_s17, 4  ;;  %s222_s18 = int_to_ptr.vmem [resolvable:$true] %s221_s18 }
  0x27   : > { %s1443_s20 = smov [#allocation9]   ;;  %s1161_s9 = scalar_lea.vmem %s222_s18, 1024 }
  0x28   : > { %p1601_p2 = pnand %p993_p13, %p1559_p1  ;;  %s245_s8 = sshll.u32 %s1443_s20, 4  ;;  %s246_s8 = int_to_ptr.vmem [resolvable:$true] %s245_s8 }
  0x29   : > { %p1162_p5 = scmp.ne.s32.totalorder %s222_s18, %s1161_s9  ;;  %p1169_p9 = scmp.lt.s32.totalorder %s222_s18, %s222_s18 }
  0x2a   : > { %p1152_p0 = pneg %p1601_p2  ;;  %p1170_p11 = scmp.lt.s32.totalorder %s1161_s9, %s1161_s9 }
  0x2c   : > { %p1164_p7 = pnand %p1162_p5, %p1152_p0  ;;  %p1171_p10 = por %p1170_p11, %p1169_p9 }
  0x2e   : > { %p1165_p8 = pneg %p1164_p7 }
  0x30   : > { %p1172_p6 = pnand %p1171_p10, %p1165_p8 }
  0x32   : > { %1175 = shalt.err (!%p1172_p6)
}
  0x33   : > { %s1444_s17 = smov 256   ;;  %s1445_s15 = smov 16  }
  0x34   : > { %s1885_s1 = sld [smem:[#allocation27_spill]]  ;;  %s1187_s14 = scalar_lea.vmem %s246_s8, 256 }
  0x35   : > { %p1188_p13 = scmp.ne.s32.totalorder %s246_s8, %s1187_s14  ;;  %p1195_p1 = scmp.lt.s32.totalorder %s246_s8, %s246_s8 }
  0x36   : > { %p1196_p11 = scmp.lt.s32.totalorder %s1187_s14, %s1187_s14 }
  0x37   : > { %p1190_p5 = pnand %p1188_p13, %p1152_p0 }
  0x38   : > { %p1197_p10 = por %p1196_p11, %p1195_p1 }
  0x39   : > { %p1191_p7 = pneg %p1190_p5 }
  0x3a   : > { %996 = dma.hbm_to_vmem [thread:$0]  (!%p1601_p2), %s1885_s1, 1024, %s222_s18, [#allocation7], %s1444_s17, %s1444_s17, %s1445_s15  }
  0x3b   : > { %p1198_p6 = pnand %p1197_p10, %p1191_p7 }
  0x3d   : > { %1201 = shalt.err (!%p1198_p6)
}
  0x3e   : > { %s1446_s9 = smov 128   ;;  %s1447_s21 = smov 8  }
  0x3f   : > { %s1886_s3 = sld [smem:[#allocation29_spill]]  ;;  %s1448_s18 = smov [#allocation8]  }
  0x40   : > { %s235_s17 = sshll.u32 %s1448_s18, 4  ;;  %s1449_s20 = smov [#allocation11]   ;;  %s236_s17 = int_to_ptr.vmem [resolvable:$true] %s235_s17 }
  0x41   : > { %s258_s1 = sshll.u32 %s1449_s20, 4  ;;  %s1213_s14 = scalar_lea.vmem %s236_s17, 64  ;;  %s259_s1 = int_to_ptr.vmem [resolvable:$true] %s258_s1 }
  0x42   : > { %p1214_p1 = scmp.ne.s32.totalorder %s236_s17, %s1213_s14  ;;  %p1221_p13 = scmp.lt.s32.totalorder %s236_s17, %s236_s17 }
  0x43   : > { %p1222_p5 = scmp.lt.s32.totalorder %s1213_s14, %s1213_s14 }
  0x44   : > { %p1216_p8 = pnand %p1214_p1, %p1152_p0 }
  0x45   : > { %1002 = dma.hbm_to_vmem [thread:$0]  (!%p1601_p2), %s1886_s3, 256, %s246_s8, [#allocation10], %s1446_s9, %s1446_s9, %s1447_s21  }
  0x46   : > { %p1217_p9 = pneg %p1216_p8  ;;  %p1223_p7 = por %p1222_p5, %p1221_p13 }
  0x48   : > { %p1224_p11 = pnand %p1223_p7, %p1217_p9 }
  0x4a   : > { %1227 = shalt.err (!%p1224_p11)
}
  0x4b   : > { %s1887_s2 = sld [smem:[#allocation28_spill]]  ;;  %s1239_s15 = scalar_lea.vmem %s259_s1, 256 }
  0x4c   : > { %p1240_p10 = scmp.ne.s32.totalorder %s259_s1, %s1239_s15  ;;  %p1247_p1 = scmp.lt.s32.totalorder %s259_s1, %s259_s1 }
  0x4d   : > { %p1248_p8 = scmp.lt.s32.totalorder %s1239_s15, %s1239_s15 }
  0x4e   : > { %p1242_p6 = pnand %p1240_p10, %p1152_p0 }
  0x4f   : > { %p1249_p12 = por %p1248_p8, %p1247_p1 }
  0x50   : > { %p1243_p4 = pneg %p1242_p6 }
  0x51   : > { %999 = dma.hbm_to_vmem [thread:$0]  (!%p1601_p2), %s1887_s2, 64, %s236_s17, [#allocation7]  }
  0x52   : > { %p1250_p3 = pnand %p1249_p12, %p1243_p4 }
  0x54   : > { %1253 = shalt.err (!%p1250_p3)
}
  0x55   : > { %s1888_s4 = sld [smem:[#allocation30_spill]]  ;;  %s37_s19 = sadd.s32 1, %s1432_s29 }
  0x56   : > { %s40_s17 = sadd.s32 1, %s1436_s30  ;;  %p38_p3 = scmp.ge.s32.totalorder %s37_s19, 2 }
  0x57   : > { %s47_s14 = sadd.s32 1, %s1420_s26  ;;  %p54_p4 = scmp.ne.s32.totalorder %s1420_s26, %s1416_s25 }
  0x58   : > { %p55_p12 = scmp.eq.s32.totalorder %s1440_s7, 0  ;;  %s1918_s19 = smov (%p38_p3, %s37_s19), 0 }
  0x59   : > { %1889 = sst [smem:[#allocation26_spill]] %s1918_s19  ;;  %s1920_s17 = smov (!%p38_p3, %s40_s17), %s1436_s30 }
  0x5a   : > { %p1654_p0 = por %p55_p12, %p54_p4  ;;  %p1891_p9 = scmp.ne.s32.totalorder %s1875_s11, 0 }
  0x5b   : > { %1005 = dma.hbm_to_vmem [thread:$0]  (!%p1601_p2), %s1888_s4, 256, %s259_s1, [#allocation10], %s1446_s9, %s1446_s9, %s1447_s21  }
  0x5c   : > { %s155_s1 = ssub.s32 %s1432_s29, %s1918_s19  ;;  %p42_p2 = scmp.ge.s32.totalorder %s1920_s17, 2 }
  0x5d   : > { %s159_s21 = sadd.s32 1, %s1408_s23  ;;  %p1663_p13 = por %p1891_p9, %p54_p4 }
  0x5e   : > { %p1021_p5 = scmp.lt.s32.totalorder %s1440_s7, 4  ;;  %s1922_s17 = smov (%p42_p2, %s1920_s17), 0 }
  0x5f   : > { %s272_s24 = sand.u32 1, %s1420_s26   ;;  %s948_s15 = sshll.u32 %s1436_s30, 7 }
  0x60   : > { %s44_s18 = ssub.s32 %s1436_s30, %s1922_s17  ;;  %s907_s2 = sshll.u32 %s272_s24, 3 }
  0x61   : > { %p45_p7 = scmp.eq.s32.totalorder %s44_s18, 0  ;;  %s156_s20 = sor.u32 %s155_s1, %s44_s18 }
  0x62   : > { %p157_p11 = scmp.eq.s32.totalorder %s156_s20, 0  ;;  %s282_s29 = scalar_lea.hbm %s1842_s0, %s948_s15 }
  0x63   : > { %s1675_s3 = scalar_select %p45_p7, %s1420_s26, %s47_s14  }
  0x64   : > { %s1678_s11 = scalar_select %p157_p11, %s1408_s23, %s159_s21  }
  0x65   : > { %s276_s5 = scalar_lea.vmem [#allocation3], %s907_s2  ;;  %p1687_p10 = pnand %p1021_p5, %p1654_p0 }
  0x66   : > { %s283_s13 = sshll.u32 %s276_s5, 4  ;;  %s273_s1 = scalar_lea.sflag [#allocation4], %s272_s24  ;;  %s284_s13 = int_to_ptr.vmem [resolvable:$true] %s283_s13 }
  0x67   : > { %p1256_p6 = pneg %p1687_p10  ;;  %s1267_s14 = scalar_lea.vmem %s284_s13, 128 }
  0x68   : > { %p1268_p1 = scmp.ne.s32.totalorder %s284_s13, %s1267_s14  ;;  %s1450_s21 = smov [#allocation3]  }
  0x69   : > { %s1272_s4 = sshll.u32 %s1450_s21, 4  ;;  %s1273_s4 = int_to_ptr.vmem [resolvable:$false] %s1272_s4 }
  0x6a   : > { %p1270_p8 = pnand %p1268_p1, %p1256_p6  ;;  %s1274_s2 = scalar_lea.vmem %s1273_s4, 256 }
  0x6b   : > { %p1275_p4 = scmp.lt.s32.totalorder %s284_s13, %s1273_s4  ;;  %p1276_p12 = scmp.lt.s32.totalorder %s1274_s2, %s1267_s14 }
  0x6c   : > { %p1271_p3 = pneg %p1270_p8 }
  0x6d   : > { %p1277_p2 = por %p1276_p12, %p1275_p4 }
  0x6f   : > { %p1278_p0 = pnand %p1277_p2, %p1271_p3 }
  0x71   : > { %1281 = shalt.err (!%p1278_p0)
}
  0x72   : > { %s1451_s5 = smov 64   ;;  %s1452_s19 = smov 4  }
  0x73   : > { %1009 = dma.hbm_to_vmem [thread:$0]  (!%p1687_p10), %s282_s29, 128, %s284_s13, %s273_s1, %s1451_s5, %s1451_s5, %s1452_s19  }
  0x74   : > { %p1894_p9 = scmp.ne.s32.totalorder %s1883_s16, 0 }
  0x75   : > { %s1698_s8 = sand.u32 (!%p1894_p9), 1, %s1416_s25   ;;  %p1895_p5 = scmp.ne.s32.totalorder (!%p1894_p9), %s1876_s12, 0 }
  0x76   : > { %295 = sbr.rel (%p1894_p9) target bundleno = 813 (0x32d), region = 40  ;;  %s911_s24 = sshll.u32 (!%p1894_p9), %s1698_s8, 3 }
  0x77   : > { %s298_s15 = scalar_lea.sflag (!%p1894_p9), [#allocation4], %s1698_s8  ;;  %s301_s18 = scalar_lea.vmem (!%p1894_p9), [#allocation3], %s911_s24 }
  0x7b   : > { %1379 = dma.done.wait (%p1895_p5), %s298_s15, 128  }
  0x7c   : > { %1381 = vsyncadd (%p1895_p5), %s298_s15, 4294967168  ;;  %p1896_p7 = scmp.ne.s32.totalorder %s1874_s10, 0 }
  0x7e   : > { %1383 = dma.done.wait (%p1896_p7), [#allocation7], 1088  }
  0x7f   : > { %1385 = vsyncadd (%p1896_p7), [#allocation7], 4294966208 }
  0x80   : > { %1387 = dma.done.wait (%p1896_p7), [#allocation10], 512  }
  0x81   : > { %1389 = vsyncadd (%p1896_p7), [#allocation10], 4294966784  ;;  %s341_s6 = sand.u32 1, %s1404_s22   ;;  %s917_s29 = sshll.u32 %s1698_s8, 6 }
  0x82   : > { %s916_s12 = sshll.u32 %s341_s6, 4  ;;  %s1720_s16 = scalar_lea.vmem [#allocation13], %s917_s29 }
  0x83   : > { %s1718_s13 = scalar_lea.vmem [#allocation12], %s916_s12  ;;  %p918_p11 = scmp.ne.s32.totalorder %s1424_s27, 0 }
  0x84   : > { %s1454_s10 = smov (!%p918_p11), 64  }
  0x85   : > { %355 = sbr.rel (%p918_p11) target bundleno = 471 (0x1d7), region = 64 }
  0x8a   : > { %v1135_v0 = vld [vmem:[#allocation6 + $0x2c] ss:$16 sps:$4 sm:$0xff]   ;;  %v1137_v1 = vld [vmem:[#allocation6 + $0x28] ss:$16 sps:$4 sm:$0xff]   ;;  %v1453_v2 = vmov 0   ;;  %vm433_vm0 = vcmask 261120   ;;  %v368_v10 = vlaneseq }
  0x8b   : > { %512 = vmatprep.mubr.bf16.mxu1 %v1453_v2  ;;  %469 = vmatprep.mubr.bf16.mxu0 %v1453_v2  ;;  %v1138_v3 = vld [vmem:[#allocation6 + $0xc] ss:$16 sps:$4 sm:$0xff]   ;;  %v1140_v4 = vld [vmem:[#allocation6 + $0x8] ss:$16 sps:$4 sm:$0xff]   ;;  %v1142_v5 = vld [vmem:[#allocation6 + $0x24] ss:$16 sps:$4 sm:$0xff]  }
  0x8c   : > { %492 = vmatprep.subr.bf16.mxu1 %v1135_v0  ;;  %v1144_v6 = vld [vmem:[#allocation6 + $0x20] ss:$16 sps:$4 sm:$0xff]   ;;  %v1145_v7 = vld [vmem:[#allocation6 + $0x4] ss:$16 sps:$4 sm:$0xff]   ;;  %449 = vmatprep.subr.bf16.mxu0 %v1142_v5  ;;  %v369_v11 = vshrl.u32 %v368_v10, 7 }
  0x8d   : > { %493 = vmatpush1.bf16.msra.mxu1 %v1137_v1  ;;  %v1141_v8 = vld [vmem:[%s301_s18] sm:$0xff]   ;;  %450 = vmatpush1.bf16.msra.mxu0 %v1144_v6  ;;  %v366_v13 = vld [vmem:[#allocation8] sm:$0xf]  ;;  %v531_v37 = vld [vmem:[#allocation9] sm:$0xff] }
  0x8e   : > { %494 = vmatprep.subr.bf16.mxu1 %v1138_v3  ;;  %v1147_v9 = vld [vmem:[#allocation6] ss:$16 sps:$4 sm:$0xff]   ;;  %451 = vmatprep.subr.bf16.mxu0 %v1145_v7  ;;  %v378_v12 = vsub.s32 2, %v369_v11  ;;  %v382_v14 = vsub.s32 3, %v369_v11  ;;  %v370_v16 = vsub.s32 0, %v369_v11  ;;  %v374_v18 = vsub.s32 1, %v369_v11 }
  0x8f   : > { %v533_v38 = vld [vmem:[#allocation11] sm:$0xff]  ;;  %v532_v43 = vld [vmem:[#allocation9 + $0x8] sm:$0xff]  ;;  %v534_v44 = vld [vmem:[#allocation11 + $0x8] sm:$0xff] }
  0x90   : > { %v379_v15 = vrot.slane %v366_v13, %v378_v12  ;;  %v383_v17 = vrot.slane %v366_v13, %v382_v14  ;;  %v371_v21 = vrot.slane %v366_v13, %v370_v16  ;;  %v375_v24 = vrot.slane %v366_v13, %v374_v18 }
  0x91   : > { %495 = vmatpush1.bf16.msra.mxu1 %v1140_v4  ;;  %452 = vmatpush1.bf16.msra.mxu0 %v1147_v9 }
  0x94   : > { %929 = vmatmul.mubr.msk.bf16.vlgmr.msra.gmra.mxu1 %vm433_vm0, %v1141_v8  ;;  %928 = vmatmul.mubr.msk.bf16.vlgmr.msra.gmra.mxu0 %vm433_vm0, %v1141_v8 }
 0x154   : > { %v514_v19 = vpop.f32.mrf.mxu1  ;;  %v471_v26 = vpop.f32.mrf.mxu0 }
 0x155   : > { %v515_v20 = vadd.f32 %v514_v19, %v379_v15  ;;  %v472_v28 = vadd.f32 %v471_v26, %v371_v21 }
 0x156   : > { %v516_v22 = vpop.f32.mrf.mxu1  ;;  %v473_v30 = vpop.f32.mrf.mxu0 }
 0x157   : > { %525 = vst [vmem:[%s1720_s16 + $0x10] sm:$0xff] %v515_v20  ;;  %v517_v23 = vadd.f32 %v516_v22, %v383_v17  ;;  %537 = vrot.lane.b32.xlu0 %v515_v20, %s1454_s10  ;;  %523 = vst [vmem:[%s1720_s16] sm:$0xff] %v472_v28  ;;  %v474_v32 = vadd.f32 %v473_v30, %v375_v24  ;;  %v535_v40 = vmul.f32 %v531_v37, %v515_v20 }
 0x158   : > { %v518_v25 = vpop.f32.mrf.mxu1  ;;  %v475_v33 = vpop.f32.mrf.mxu0 }
 0x159   : > { %526 = vst [vmem:[%s1720_s16 + $0x18] sm:$0xff] %v517_v23  ;;  %v519_v27 = vadd.f32 %v518_v25, %v379_v15  ;;  %557 = vrot.lane.b32.xlu1 %v517_v23, %s1454_s10  ;;  %524 = vst [vmem:[%s1720_s16 + $0x8] sm:$0xff] %v474_v32  ;;  %v476_v34 = vadd.f32 %v475_v33, %v371_v21  ;;  %v555_v46 = vmul.f32 %v531_v37, %v517_v23 }
 0x15a   : > { %v520_v29 = vpop.f32.mrf.mxu1  ;;  %v477_v35 = vpop.f32.mrf.mxu0 }
 0x15b   : > { %529 = vst [vmem:[%s1720_s16 + $0x30] sm:$0xff] %v519_v27  ;;  %v521_v31 = vadd.f32 %v520_v29, %v383_v17  ;;  %539 = vrot.lane.b32.xlu0 %v519_v27, %s1454_s10  ;;  %527 = vst [vmem:[%s1720_s16 + $0x20] sm:$0xff] %v476_v34  ;;  %v478_v36 = vadd.f32 %v477_v35, %v375_v24  ;;  %v536_v51 = vmul.f32 %v532_v43, %v519_v27 }
 0x15d   : > { %530 = vst [vmem:[%s1720_s16 + $0x38] sm:$0xff] %v521_v31  ;;  %559 = vrot.lane.b32.xlu1 %v521_v31, %s1454_s10  ;;  %528 = vst [vmem:[%s1720_s16 + $0x28] sm:$0xff] %v478_v36  ;;  %v556_v56 = vmul.f32 %v532_v43, %v521_v31 }
 0x1c9   : > { %v538_v39 = vpop.permute.xlu0 %537 }
 0x1ca   : > { %v541_v41 = vmul.f32 %v538_v39, %v533_v38 }
 0x1cb   : > { %v558_v42 = vpop.permute.xlu1 %557 }
 0x1cc   : > { %v543_v45 = vadd.f32 %v541_v41, %v535_v40  ;;  %v561_v47 = vmul.f32 %v558_v42, %v533_v38 }
 0x1cd   : > { %v540_v48 = vpop.permute.xlu0 %539 }
 0x1ce   : > { %v949_v49 = vpack.c.bf16 %v543_v45, %v543_v45  ;;  %v563_v50 = vadd.f32 %v561_v47, %v555_v46  ;;  %v542_v52 = vmul.f32 %v540_v48, %v534_v44 }
 0x1cf   : > { %v560_v53 = vpop.permute.xlu1 %559 }
 0x1d0   : > { %553 = vst [vmem:[#allocation2] sm:$0xf] %v949_v49  ;;  %v951_v54 = vpack.c.bf16 %v563_v50, %v563_v50  ;;  %v544_v55 = vadd.f32 %v542_v52, %v536_v51  ;;  %v562_v57 = vmul.f32 %v560_v53, %v534_v44 }
 0x1d2   : > { %573 = vst [vmem:[#allocation2 + $0x4] sm:$0xf] %v951_v54  ;;  %v950_v58 = vpack.c.bf16 %v544_v55, %v544_v55  ;;  %v564_v59 = vadd.f32 %v562_v57, %v556_v56 }
 0x1d4   : > { %554 = vst [vmem:[#allocation2 + $0x8] sm:$0xf] %v950_v58  ;;  %v952_v60 = vpack.c.bf16 %v564_v59, %v564_v59 }
 0x1d6   : > { %574 = vst [vmem:[#allocation2 + $0xc] sm:$0xf] %v952_v60 }
 0x1d7 PF: > { %s934_s20 = sshll.u32 %s1424_s27, 3  ;;  %v1455_v61 = vmov 0.0   ;;  %vm1456_vm1 = vmmov 0   ;;  %s1457_s2 = smov 64  }
 0x1d8   : > { %s576_s1 = sshra.s32 %s934_s20, 3  ;;  %959 = vmatprep.subr.bf16.mxu0 %v1455_v61  ;;  %965 = vmatprep.subr.bf16.mxu1 %v1455_v61  ;;  %s585_s4 = scalar_lea.vmem [#allocation9], %s934_s20 }
 0x1d9   : > { %s953_s14 = sshll.u32 %s576_s1, 5  ;;  %961 = vmatprep.mubr.msk.bf16.mxu0 %vm1456_vm1, %v1455_v61  ;;  %967 = vmatprep.mubr.msk.bf16.mxu1 %vm1456_vm1, %v1455_v61  ;;  %v586_v2 = vld [vmem:[%s585_s4] sm:$0xff]  ;;  %s587_s5 = scalar_lea.vmem [#allocation11], %s934_s20 }
 0x1da   : > { %s580_s21 = scalar_lea.vmem %s1720_s16, %s953_s14 [#allocation13]  ;;  %v588_v7 = vld [vmem:[%s587_s5] sm:$0xff]  ;;  %s954_s19 = sshll.u32 %s1428_s28, 10 }
 0x1db   : > { %v1148_v62 = vld [vmem:[#allocation2] ss:$8 sps:$4 sm:$0xff]   ;;  %s1897_s18 = sld [smem:[#allocation32_spill]]  ;;  %s737_s12 = sshll.u32 %s1720_s16, 4  ;;  %s1740_s12 = int_to_ptr.vmem [resolvable:$true] %s737_s12 }
 0x1dc   : > { %960 = vmatpush3.bf16.xpose.msra.mxu0 %v1148_v62  ;;  %v581_v0 = vld [vmem:[%s580_s21] sm:$0xff]  ;;  %v582_v1 = vld [vmem:[%s580_s21 + $0x8] sm:$0xff]  ;;  %s707_s10 = scalar_lea.sflag [#allocation14], %s1698_s8  ;;  %s1282_s20 = scalar_lea.vmem %s1740_s12, 1024 }
 0x1dd   : > { %v1149_v63 = vld [vmem:[#allocation2 + $0x4] ss:$8 sps:$4 sm:$0xff]   ;;  %v583_v3 = vmul.f32 0.088388346, %v581_v0  ;;  %v584_v4 = vmul.f32 0.088388346, %v582_v1  ;;  %p1283_p10 = scmp.ne.s32.totalorder %s1740_s12, %s1282_s20 }
 0x1de   : > { %966 = vmatpush3.bf16.xpose.msra.mxu1 %v1149_v63  ;;  %s1458_s1 = smov [#allocation13]  }
 0x1df   : > { %590 = vrot.lane.b32.xlu0 %v583_v3, %s1457_s2  ;;  %v589_v5 = vmul.f32 %v586_v2, %v583_v3  ;;  %v645_v6 = vmul.f32 %v586_v2, %v584_v4  ;;  %p1284_p6 = pnand %p1283_p10, %p1663_p13  ;;  %s1286_s14 = sshll.u32 %s1458_s1, 4  ;;  %s1287_s14 = int_to_ptr.vmem [resolvable:$false] %s1286_s14 }
 0x1e0   : > { %s1288_s21 = scalar_lea.vmem %s1287_s14, 2048  ;;  %p1289_p8 = scmp.lt.s32.totalorder %s1740_s12, %s1287_s14 }
 0x1e1   : > { %s1737_s29 = scalar_lea.hbm %s1897_s18, %s954_s19  ;;  %p1285_p1 = pneg %p1284_p6 }
 0x1e2   : > { %p1290_p3 = scmp.lt.s32.totalorder %s1288_s21, %s1282_s20 }
 0x1e3   : > { %646 = vrot.lane.b32.xlu0 %v584_v4, %s1457_s2 }
 0x1e4   : > { %p1291_p4 = por %p1290_p3, %p1289_p8 }
 0x1e6   : > { %p1292_p12 = pnand %p1291_p4, %p1285_p1 }
 0x251   : > { %v591_v8 = vpop.permute.xlu0 %590 }
 0x252   : > { %v592_v9 = vmul.f32 %v591_v8, %v588_v7 }
 0x254   : > { %v593_v10 = vadd.f32 %v592_v9, %v589_v5 }
 0x255   : > { %v647_v11 = vpop.permute.xlu0 %646 }
 0x256   : > { %v594_v12 = vpack.c.bf16 %v593_v10, %v593_v10  ;;  %v648_v13 = vmul.f32 %v647_v11, %v588_v7 }
 0x258   : > { %v649_v14 = vadd.f32 %v648_v13, %v645_v6  ;;  %962 = vmatmul.mubr.bf16.vlgmr.msra.gmra.mxu0 %v594_v12 }
 0x25a   : > { %v650_v15 = vpack.c.bf16 %v649_v14, %v649_v14 }
 0x25c   : > { %968 = vmatmul.mubr.bf16.vlgmr.msra.gmra.mxu1 %v650_v15 }
 0x25d   : > { %1295 = shalt.err (!%p1292_p12)
}
 0x25e   : > { %s1296_s16 = scalar_lea.hbm %s1737_s29, 1024  ;;  %s1300_s5 = scalar_lea.hbm %s1897_s18, 2048 }
 0x25f   : > { %p1297_p2 = scmp.ne.s32.totalorder %s1737_s29, %s1296_s16  ;;  %p1301_p5 = scmp.lt.s32.totalorder %s1737_s29, %s1897_s18 }
 0x260   : > { %p1302_p7 = scmp.lt.s32.totalorder %s1300_s5, %s1296_s16 }
 0x261   : > { %p1298_p0 = pnand %p1297_p2, %p1663_p13 }
 0x262   : > { %p1303_p11 = por %p1302_p7, %p1301_p5 }
 0x263   : > { %p1299_p9 = pneg %p1298_p0 }
 0x265   : > { %p1304_p10 = pnand %p1303_p11, %p1299_p9 }
 0x267   : > { %1307 = shalt.err (!%p1304_p10)
}
 0x268   : > { %s1459_s15 = smov 512   ;;  %s1460_s20 = smov 32   ;;  %vm643_vm2 = vcmask 130048  }
 0x269   : > { %990 = dma.vmem_to_hbm [thread:$0]  (%p1663_p13), %s1740_s12, 1024, %s1737_s29, %s707_s10, %s1459_s15, %s1459_s15, %s1460_s20  }
 0x26a   : > { %s942_s1 = sshll.u32 %s1428_s28, 2  ;;  %s1898_s21 = sld [smem:[#allocation23_spill]] }
 0x26b   : > { %s718_s14 = sadd.s32 %s1424_s27, %s942_s1  ;;  %s721_s4 = sshll.u32 %s1718_s13, 4  ;;  %s1774_s4 = int_to_ptr.vmem [resolvable:$true] %s721_s4 }
 0x26c   : > { %s943_s16 = sshll.u32 %s718_s14, 7  ;;  %s1899_s19 = sld [smem:[#allocation31_spill]] }
 0x26d   : > { %s1779_s27 = scalar_lea.sflag [#allocation5], %s341_s6  ;;  %s1308_s28 = scalar_lea.vmem %s1774_s4, 256 }
 0x26e   : > { %p1309_p13 = scmp.ne.s32.totalorder %s1774_s4, %s1308_s28  ;;  %s1461_s9 = smov [#allocation12]  }
 0x26f   : > { %s1312_s8 = sshll.u32 %s1461_s9, 4  ;;  %s1313_s8 = int_to_ptr.vmem [resolvable:$false] %s1312_s8 }
 0x270   : > { %p1900_p6 = scmp.ne.s32.totalorder %s1898_s21, 0  ;;  %s1314_s29 = scalar_lea.vmem %s1313_s8, 512 }
 0x271   : > { %p1315_p3 = scmp.lt.s32.totalorder %s1774_s4, %s1313_s8  ;;  %p1316_p4 = scmp.lt.s32.totalorder %s1314_s29, %s1308_s28 }
 0x272   : > { %s1772_s24 = scalar_lea.hbm %s1899_s19, %s943_s16  ;;  %p1310_p1 = pnand %p1309_p13, %p1900_p6 }
 0x273   : > { %p1317_p12 = por %p1316_p4, %p1315_p3 }
 0x274   : > { %p1311_p8 = pneg %p1310_p1 }
 0x276   : > { %p1318_p2 = pnand %p1317_p12, %p1311_p8 }
 0x318   : > { %v637_v16 = vpop.f32.mrf.mxu0 }
 0x319   : > { %644 = vst.msk [vmem:[%s1718_s13] sm:$0xff] %vm643_vm2, %v637_v16 }
 0x31a   : > { %v963_v17 = vpop.f32.mrf.mxu0 }
 0x31c   : > { %v640_v18 = vpop.f32.mrf.mxu0  ;;  %v693_v19 = vpop.f32.mrf.mxu1 }
 0x31d   : > { %939 = vst.msk [vmem:[%s1718_s13 + $0x8] sm:$0xff] %vm643_vm2, %v693_v19 }
 0x31e   : > { %v964_v20 = vpop.f32.mrf.mxu0  ;;  %v969_v21 = vpop.f32.mrf.mxu1 }
 0x31f   : > { %1321 = shalt.err (!%p1318_p2)
}
 0x320   : > { %s1322_s6 = scalar_lea.hbm %s1772_s24, 256  ;;  %s1326_s10 = scalar_lea.hbm %s1899_s19, 1024 }
 0x321   : > { %p1323_p0 = scmp.ne.s32.totalorder %s1772_s24, %s1322_s6  ;;  %p1327_p7 = scmp.lt.s32.totalorder %s1772_s24, %s1899_s19 }
 0x322   : > { %p1328_p11 = scmp.lt.s32.totalorder %s1326_s10, %s1322_s6 }
 0x323   : > { %p1324_p9 = pnand %p1323_p0, %p1900_p6 }
 0x324   : > { %p1329_p10 = por %p1328_p11, %p1327_p7 }
 0x325   : > { %p1325_p5 = pneg %p1324_p9 }
 0x327   : > { %p1330_p13 = pnand %p1329_p10, %p1325_p5 }
 0x329   : > { %1333 = shalt.err (!%p1330_p13)
}
 0x32a   : > { %s1462_s1 = smov 128   ;;  %s1463_s14 = smov 256   ;;  %v696_v22 = vpop.f32.mrf.mxu1 }
 0x32b   : > { %s1464_s16 = smov 8  }
 0x32c   : > { %989 = dma.vmem_to_hbm [thread:$0]  (%p1900_p6), %s1774_s4, 256, %s1772_s24, %s1779_s27, %s1462_s1, %s1463_s14, %s1464_s16   ;;  %v970_v23 = vpop.f32.mrf.mxu1 }
 0x32d PF: > { %s1901_s2 = sld [smem:[#allocation20_spill]]  ;;  %p1026_p1 = scmp.ge.s32.totalorder %s1440_s7, 2 }
 0x32e   : > { %s1902_s5 = sld [smem:[#allocation24_spill]] }
 0x333   : > { %s752_s28 = sand.u32 1, %s1901_s2  }
 0x334   : > { %p1903_p8 = scmp.ne.s32.totalorder %s1902_s5, 0  ;;  %s753_s9 = scalar_lea.sflag [#allocation5], %s752_s28 }
 0x336   : > { %p1011_p3 = pnand %p1026_p1, %p1903_p8 }
 0x338   : > { %p1012_p4 = pneg %p1011_p3 }
 0x33a   : > { %1391 = dma.done.wait (%p1012_p4), %s753_s9, 256  }
 0x33b   : > { %1393 = vsyncadd (%p1012_p4), %s753_s9, 4294967040  ;;  %s1904_s8 = sld [smem:[#allocation21_spill]] }
 0x33c   : > { %s1905_s29 = sld [smem:[#allocation25_spill]] }
 0x341   : > { %s761_s6 = sand.u32 1, %s1904_s8  }
 0x342   : > { %p1906_p12 = scmp.ne.s32.totalorder %s1905_s29, 0  ;;  %s762_s21 = scalar_lea.sflag [#allocation14], %s761_s6 }
 0x344   : > { %p1014_p2 = pnand %p1026_p1, %p1906_p12 }
 0x346   : > { %p1015_p6 = pneg %p1014_p2 }
 0x348   : > { %1395 = dma.done.wait (%p1015_p6), %s762_s21, 1024  }
 0x349   : > { %1397 = vsyncadd (%p1015_p6), %s762_s21, 4294966272  ;;  %s28_s7 = sadd.s32 1, %s1440_s7   ;;  %s1907_s27 = sld [smem:[#allocation22_spill]] }
 0x34a   : > { %p25_p0 = scmp.ge.s32.totalorder %s28_s7, 6   ;;  %s1908_s29 = sld [smem:[#allocation26_spill]] }
 0x34b   : > { %s1909_s21 = smov %s1404_s22  ;;  %s1910_s22 = smov %s1408_s23 }
 0x34c   : > { %s1911_s23 = smov %s1678_s11  ;;  %s1912_s24 = smov %s1416_s25 }
 0x34d   : > { %s1913_s25 = smov %s1420_s26  ;;  %s1914_s26 = smov %s1675_s3 }
 0x34e   : > { %s1915_s28 = smov %s1436_s30  ;;  %s1916_s30 = smov %s1922_s17 }
 0x34f   :  { %27 = sbr.rel (!%p25_p0) target bundleno = 20 (0x14), region = 126 }
 0x354   :  { %767 = vsyncpa [#allocation4], 1 }
 0x355   :  { %769 = vsyncpa [#allocation4 + $0x1], 1 }
 0x356   :  { %770 = vsyncpa [#allocation7], 1 }
 0x357   :  { %771 = vsyncpa [#allocation10], 1 }
 0x358   :  { %772 = vsyncpa [#allocation5], 1 }
 0x359   :  { %774 = vsyncpa [#allocation5 + $0x1], 1 }
 0x35a   :  { %775 = vsyncpa [#allocation14], 1 }
 0x35b   :  { %777 = vsyncpa [#allocation14 + $0x1], 1 }

</bundles_post_ra>
